<compile_context>
chip_gen: v7x
topology: tpu7x:2x2x1
jax: 0.10.0
libtpu: 0.0.40
codegen_flags: <defaults>
</compile_context>

<pallas_src>
import math

import jax
import jax.numpy as jnp
from jax import lax
from jax.experimental import pallas as pl
from jax.experimental.pallas import tpu as pltpu  # noqa: F401  (TPU backend)


def _make_conv1d_block_kernel(n, l, lout, pool, pad_len):
    """Builds the fused conv+bn+relu+avgpool kernel (static sizes via closure)."""

    def kernel(x_ref, w_ref, s_ref, r_ref, o_ref):
        # x_ref: (N*L, K*Cin)   im2col slab (channels on the lane axis)
        # w_ref: (K*Cin, Cout)  BN-scale-folded, tap-stacked conv weight
        # s_ref: (1, Cout)      folded shift = bias*scale + beta - mean*scale
        # r_ref: (N*Lout, 1)    reciprocal pool counts (ceil_mode), tiled over N
        # o_ref: (N*Lout, Cout)
        cout = o_ref.shape[-1]

        # 1.+2. conv1d ('same' padding already in the im2col slab) with the BN
        #       scale folded into the weights -> a single MXU matmul, then the
        #       folded bias/BN shift.
        y = jnp.dot(x_ref[...], w_ref[...], preferred_element_type=jnp.float32)
        y = y + s_ref[...]

        # 3. ReLU
        y = jnp.maximum(y, 0.0)

        # 4. avg pool (ceil_mode=True): zero-pad rows (exact, since padded rows
        #    contribute 0 to the window sums after ReLU), reshape so the pool
        #    window sits on the sublane axis, sum, and scale by 1/valid_count.
        if pad_len > 0:
            y = y.reshape(n, l, cout)
            y = jnp.concatenate(
                [y, jnp.zeros((n, pad_len, cout), jnp.float32)], axis=1)
        y = y.reshape(n * lout, pool, cout)
        # NOTE: Cout=8 lanes -> masked stores; realistic configs should present
        # a lane-dense (>=128-wide) output slab instead.
        o_ref[...] = jnp.sum(y, axis=1) * r_ref[...]

        # 5. dropout: eval mode -> identity
        # TODO(synk): training-mode dropout / batch-stat BN intentionally
        #             omitted (this kernel implements eval-mode forward only).

    return kernel


def conv1d_block(x_ncl, w_pt, bias, bn_gamma, bn_beta, bn_mean, bn_var,
                 *, pool_size=4, eps=1e-5):
    """x_ncl: (N, Cin, L); w_pt: PyTorch layout (Cout, Cin, K). Returns (N, Cout, Lout)."""
    N, Cin, L = x_ncl.shape
    Cout, _, K = w_pt.shape
    pad = K // 2
    Lout = -(-L // pool_size)                   # ceil_mode
    pad_len = Lout * pool_size - L

    # --- wrapper glue (plain JAX, all tiny) ---
    # Fold conv bias + inference BatchNorm into the conv weights / one shift:
    #   (conv(x, w) + b) * scale + (beta - mean*scale)
    # = conv(x, w*scale) + (b*scale + beta - mean*scale)
    scale = (bn_gamma / jnp.sqrt(bn_var + eps)).astype(jnp.float32)          # (Cout,)
    shift = (bias * scale + bn_beta - bn_mean * scale).astype(jnp.float32)   # (Cout,)
    w_kic = jnp.transpose(w_pt, (2, 1, 0)).astype(jnp.float32)               # (K, Cin, Cout)
    w_stack = (w_kic * scale[None, None, :]).reshape(K * Cin, Cout)

    # im2col slab in NLC layout: slab[n*L + l, k*Cin + i] = x_pad[n, l + k, i]
    x_nlc = jnp.transpose(x_ncl, (0, 2, 1)).astype(jnp.float32)              # (N, L, Cin)
    x_padded = jnp.pad(x_nlc, ((0, 0), (pad, pad), (0, 0)))                  # (N, L+K-1, Cin)
    slab = jnp.concatenate([x_padded[:, k:k + L, :] for k in range(K)],
                           axis=-1).reshape(N * L, K * Cin)

    # ceil_mode avg-pool reciprocal counts, tiled over batch.
    counts = jnp.minimum(pool_size,
                         L - jnp.arange(Lout) * pool_size).astype(jnp.float32)
    recip = jnp.tile((1.0 / counts).reshape(Lout, 1), (N, 1))                # (N*Lout, 1)

    # Single grid step: whole (tiny) arrays live in VMEM, one kernel invocation
    # for the entire batch.
    out_flat = pl.pallas_call(
        _make_conv1d_block_kernel(N, L, Lout, pool_size, pad_len),
        out_shape=jax.ShapeDtypeStruct((N * Lout, Cout), jnp.float32),
    )(slab, w_stack, shift.reshape(1, Cout), recip)

    # back to PyTorch NCL
    return jnp.transpose(out_flat.reshape(N, Lout, Cout), (0, 2, 1))


def _reference(x_ncl, w_pt, bias, bn_gamma, bn_beta, bn_mean, bn_var,
               *, pool_size=4, eps=1e-5):
    """Pure-JAX reference with PyTorch conventions (eval mode)."""
    K = w_pt.shape[-1]
    pad = K // 2
    y = lax.conv_general_dilated(
        x_ncl, w_pt, window_strides=(1,), padding=[(pad, pad)],
        dimension_numbers=("NCH", "OIH", "NCH"))
    y = y + bias[None, :, None]
    scale = bn_gamma / jnp.sqrt(bn_var + eps)
    shift = bn_beta - bn_mean * scale
    y = y * scale[None, :, None] + shift[None, :, None]
    y = jnp.maximum(y, 0.0)
    N, C, L = y.shape
    Lout = -(-L // pool_size)
    pad_len = Lout * pool_size - L
    y_p = jnp.pad(y, ((0, 0), (0, 0), (0, pad_len)))
    sums = y_p.reshape(N, C, Lout, pool_size).sum(-1)
    counts = jnp.minimum(pool_size,
                         L - jnp.arange(Lout) * pool_size).astype(jnp.float32)
    return sums / counts[None, None, :]


if __name__ == "__main__":
    # Module hyperparameters
    in_channels, out_channels = 4, 8
    kernel_size, pool_size = 5, 4
    N, L = 2, 16

    key = jax.random.PRNGKey(0)
    k_x, k_w, k_b, k_g, k_be, k_m, k_v = jax.random.split(key, 7)

    x = jax.random.normal(k_x, (N, in_channels, L), dtype=jnp.float32)

    # Conv1d params (PyTorch weight layout: (Cout, Cin, K)), deterministic init
    fan_in = in_channels * kernel_size
    bound = 1.0 / math.sqrt(fan_in)
    w_pt = jax.random.uniform(k_w, (out_channels, in_channels, kernel_size),
                              minval=-bound, maxval=bound, dtype=jnp.float32)
    bias = jax.random.uniform(k_b, (out_channels,), minval=-bound,
                              maxval=bound, dtype=jnp.float32)

    # BatchNorm1d params / running stats (deterministic, non-trivial)
    bn_gamma = 0.5 + jax.random.uniform(k_g, (out_channels,), dtype=jnp.float32)
    bn_beta = 0.1 * jax.random.normal(k_be, (out_channels,), dtype=jnp.float32)
    bn_mean = 0.1 * jax.random.normal(k_m, (out_channels,), dtype=jnp.float32)
    bn_var = 0.5 + jax.random.uniform(k_v, (out_channels,), dtype=jnp.float32)

    out = conv1d_block(x, w_pt, bias, bn_gamma, bn_beta, bn_mean, bn_var,
                       pool_size=pool_size)
    out = jax.block_until_ready(out)

    ref = _reference(x, w_pt, bias, bn_gamma, bn_beta, bn_mean, bn_var,
                     pool_size=pool_size)

    assert out.shape == ref.shape, (out.shape, ref.shape)
    assert jnp.allclose(out, ref, atol=1e-5, rtol=1e-5), \
        float(jnp.max(jnp.abs(out - ref)))
    print("KERNEL_OK")
</pallas_src>

<mosaic_0001>
module attributes {stable_mosaic.version = 11 : i64} {
  func.func @kernel(%arg0: memref<32x20xf32, #tpu.memory_space<vmem>>, %arg1: memref<20x8xf32, #tpu.memory_space<vmem>>, %arg2: memref<1x8xf32, #tpu.memory_space<vmem>>, %arg3: memref<8x1xf32, #tpu.memory_space<vmem>>, %arg4: memref<8x8xf32, #tpu.memory_space<vmem>>) attributes {dimension_semantics = [], scalar_prefetch = 0 : i64, scratch_operands = 0 : i64, tpu.core_type = #tpu.core_type<tc>} {
    %c0 = arith.constant 0 : index
    %c0_0 = arith.constant 0 : index
    %0 = vector.load %arg0[%c0, %c0_0] : memref<32x20xf32, #tpu.memory_space<vmem>>, vector<32x20xf32>
    %c0_1 = arith.constant 0 : index
    %c0_2 = arith.constant 0 : index
    %1 = vector.load %arg1[%c0_1, %c0_2] : memref<20x8xf32, #tpu.memory_space<vmem>>, vector<20x8xf32>
    %cst = arith.constant dense<0.000000e+00> : vector<32x8xf32>
    %2 = tpu.matmul %0, %1, %cst {dimension_numbers = #tpu.dot_dimension_numbers<[1], [0], [0], [1], [0, 0, 1, 1], [], []>} : vector<32x20xf32>, vector<20x8xf32>, vector<32x8xf32> -> vector<32x8xf32>
    %c0_3 = arith.constant 0 : index
    %c0_4 = arith.constant 0 : index
    %3 = vector.load %arg2[%c0_3, %c0_4] : memref<1x8xf32, #tpu.memory_space<vmem>>, vector<1x8xf32>
    %4 = vector.broadcast %3 : vector<1x8xf32> to vector<32x8xf32>
    %5 = arith.addf %2, %4 : vector<32x8xf32>
    %cst_5 = arith.constant 0.000000e+00 : f32
    %6 = vector.broadcast %cst_5 : f32 to vector<32x8xf32>
    %7 = arith.maximumf %5, %6 : vector<32x8xf32>
    %8 = vector.shape_cast %7 : vector<32x8xf32> to vector<8x4x8xf32>
    %cst_6 = arith.constant dense<0.000000e+00> : vector<8x8xf32>
    %9 = vector.multi_reduction <add>, %8, %cst_6 [1] : vector<8x4x8xf32> to vector<8x8xf32>
    %c0_7 = arith.constant 0 : index
    %c0_8 = arith.constant 0 : index
    %10 = vector.load %arg3[%c0_7, %c0_8] : memref<8x1xf32, #tpu.memory_space<vmem>>, vector<8x1xf32>
    %11 = vector.broadcast %10 : vector<8x1xf32> to vector<8x8xf32>
    %12 = arith.mulf %9, %11 : vector<8x8xf32>
    %c0_9 = arith.constant 0 : index
    %c0_10 = arith.constant 0 : index
    %13 = vector.load %arg4[%c0_9, %c0_10] : memref<8x8xf32, #tpu.memory_space<vmem>>, vector<8x8xf32>
    tpu.vector_store %arg4[%c0_9, %c0_10], %12 {strides = array<i32>} : memref<8x8xf32, #tpu.memory_space<vmem>>, vector<8x8xf32>,
    return
  }
}

</mosaic_0001>

<bundles_post_ra>
// kernel: tpu_custom_call.1
= control target key start
LH: loop header
LB: loop body
LE: loop exit
PB: predicated region body
PF: predicated region fallthrough
CT: control target
= control target key end

     0   :  { %vm32_vm0 = vcmask 162816   ;;  %vm45_vm1 = vcmask 1043456   ;;  %s423_s0 = inlined_call_operand.vmem [shape: f32[32,20], index: 0, kind: input, shape index: {}]   ;;  %s424_s1 = inlined_call_operand.vmem [shape: f32[20,8], index: 1, kind: input, shape index: {}]   ;;  %s425_s2 = inlined_call_operand.vmem [shape: f32[1,8], index: 2, kind: input, shape index: {}]   ;;  %s426_s3 = inlined_call_operand.vmem [shape: f32[8,1], index: 3, kind: input, shape index: {}]   ;;  %s427_s4 = inlined_call_operand.hbm [shape: f32[8,8], index: 4, kind: output, shape index: {}]  }
   0x1   :  { %v22_v0 = vld [vmem:[%s424_s1] sm:$0xff]  ;;  %v23_v1 = vld [vmem:[%s424_s1 + $0x8] sm:$0xff]  ;;  %v20_v4 = vld [vmem:[%s423_s0 + $0x10] sm:$0xff] }
   0x2   :  { %v306_v2 = vpack.c.bf16 %v23_v1, %v22_v0  ;;  %v18_v3 = vld [vmem:[%s423_s0] sm:$0xff]  ;;  %v24_v5 = vld [vmem:[%s424_s1 + $0x10] sm:$0xf]  ;;  %303 = vmatprep.mubr.msk.f32.mxu1 %vm32_vm0, %v20_v4 }
   0x3   :  { %300 = vmatprep.mubr.msk.f32.mxu0 %vm32_vm0, %v18_v3 }
   0x4   :  { %9 = vsyncpa [#allocation3], 0  ;;  %307 = vmatprep.subr.bf16.mxu0 %v306_v2  ;;  %310 = vmatprep.subr.bf16.mxu1 %v306_v2  ;;  %v207_v6 = vld [vmem:[%s426_s3] sm:$0xff]  ;;  %v19_v7 = vld [vmem:[%s423_s0 + $0x8] sm:$0xff]  ;;  %v341_v9 = vmov 0   ;;  %vm150_vm2 = vcmask 60416  }
   0x5   :  { %309 = vmatpush3.bf16.msra.mxu0 %v306_v2  ;;  %312 = vmatpush3.bf16.msra.mxu1 %v306_v2  ;;  %v21_v8 = vld [vmem:[%s423_s0 + $0x18] sm:$0xff]  ;;  %v281_v10 = vld [vmem:[%s425_s2] ss:$0 sm:$0xff]  ;;  %vm244_vm3 = vcmask 1041409   ;;  %vm247_vm4 = vcmask 1042434   ;;  %vm250_vm5 = vcmask 1043459  }
   0x6   :  { %298 = vmatprep.subr.msk.mxu0 %vm45_vm1, %v24_v5  ;;  %311 = vmatprep.subr.msk.mxu1 %vm45_vm1, %v24_v5  ;;  %vm253_vm6 = vcmask 1044484   ;;  %vm256_vm7 = vcmask 1045509   ;;  %vm259_vm8 = vcmask 1046534   ;;  %s342_s0 = smov [#allocation2]   ;;  %vm262_vm9 = vcmask 1047559  }
   0x7   :  { %316 = vset.pattern.permute.xlu0 %v341_v9  ;;  %s273_s2 = sshll.u32 %s342_s0, 4  ;;  %vm265_vm10 = vcmask 64512   ;;  %s274_s2 = int_to_ptr.vmem [resolvable:$true] %s273_s2 }
   0x8   :  { %210 = vperm.xlu0 %316, %v207_v6   ;;  %s317_s5 = scalar_lea.vmem %s274_s2, 128  ;;  %p322_p1 = scmp.lt.s32.totalorder %s274_s2, %s274_s2 }
   0x9   :  { %299 = vmatpush3.msk.msra.mxu0 %vm45_vm1, %v24_v5  ;;  %313 = vmatpush3.msk.msra.mxu1 %vm45_vm1, %v24_v5  ;;  %p318_p0 = scmp.ne.s32.totalorder %s274_s2, %s317_s5  ;;  %p323_p2 = scmp.lt.s32.totalorder %s317_s5, %s317_s5 }
   0xa   :  { %301 = vmatmul.mubr.msk.f32.vlgmr.msra.gmra.mrb[0].mxu0 %vm32_vm0, %v19_v7  ;;  %304 = vmatmul.mubr.msk.f32.vlgmr.msra.gmra.mrb[0].mxu1 %vm32_vm0, %v21_v8 }
   0xb   :  { %p324_p3 = por %p323_p2, %p322_p1 }
   0xd   :  { %p325_p4 = pnand %p324_p3, %p318_p0 }
  0x87   :  { %v211_v58 = vpop.permute.xlu0 %210 }
  0x88   :  { %v212_v3 = vrot.slane %v211_v58, 1  ;;  %v213_v4 = vrot.slane %v211_v58, 2 }
  0xdd   :  { %v302_v11 = vpop.f32.mrb[0].mxu0  ;;  %v305_v12 = vpop.f32.mrb[0].mxu1 }
  0xde   :  { %v121_v13 = vadd.f32 %v302_v11, %v281_v10  ;;  %v131_v14 = vadd.f32 %v305_v12, %v281_v10  ;;  %v115_v15 = vpop.f32.mrb[1].mxu0  ;;  %v125_v16 = vpop.f32.mrb[1].mxu1  ;;  %v214_v12 = vrot.slane %v211_v58, 3 }
  0xdf   :  { %v116_v17 = vadd.f32 %v281_v10, %v115_v15  ;;  %v126_v18 = vadd.f32 %v281_v10, %v125_v16 }
  0xe0   :  { %v135_v19 = vmax.f32 %v121_v13, 0.0  ;;  %v137_v20 = vmax.f32 %v131_v14, 0.0 }
  0xe1   :  { %v134_v21 = vmax.f32 %v116_v17, 0.0  ;;  %v136_v22 = vmax.f32 %v126_v18, 0.0  ;;  %v215_v17 = vrot.slane %v211_v58, 4  ;;  %v216_v18 = vrot.slane %v211_v58, 5 }
  0xe2   :  { %v143_v23 = vcombine.high %v135_v19, %v135_v19  ;;  %v165_v24 = vsel %vm150_vm2, %v135_v19, 0.0  ;;  %v145_v25 = vcombine.high %v137_v20, %v137_v20  ;;  %v193_v26 = vsel %vm150_vm2, %v137_v20, 0.0 }
  0xe3   :  { %v166_v27 = vrot.slane %v165_v24, 4  ;;  %v194_v28 = vrot.slane %v193_v26, 4  ;;  %v142_v29 = vcombine.high %v134_v21, %v134_v21  ;;  %v151_v30 = vsel %vm150_vm2, %v134_v21, 0.0 }
  0xe4   :  { %v172_v31 = vsel %vm150_vm2, %v143_v23, 0.0  ;;  %v200_v32 = vsel %vm150_vm2, %v145_v25, 0.0  ;;  %v152_v33 = vrot.slane %v151_v30, 4  ;;  %v144_v34 = vcombine.high %v136_v22, %v136_v22 }
  0xe5   :  { %v167_v35 = vadd.f32 %v166_v27, %v165_v24  ;;  %v173_v36 = vrot.slane %v172_v31, 4  ;;  %v195_v37 = vadd.f32 %v194_v28, %v193_v26  ;;  %v201_v38 = vrot.slane %v200_v32, 4 }
  0xe6   :  { %v153_v39 = vadd.f32 %v152_v33, %v151_v30  ;;  %v158_v40 = vsel %vm150_vm2, %v142_v29, 0.0  ;;  %v179_v41 = vsel %vm150_vm2, %v136_v22, 0.0  ;;  %v186_v42 = vsel %vm150_vm2, %v144_v34, 0.0 }
  0xe7   :  { %v168_v43 = vrot.slane %v167_v35, 2  ;;  %v174_v44 = vadd.f32 %v173_v36, %v172_v31  ;;  %v196_v45 = vrot.slane %v195_v37, 2  ;;  %v202_v46 = vadd.f32 %v201_v38, %v200_v32 }
  0xe8   :  { %v154_v47 = vrot.slane %v153_v39, 2  ;;  %v159_v48 = vrot.slane %v158_v40, 4  ;;  %v180_v49 = vrot.slane %v179_v41, 4  ;;  %v187_v50 = vrot.slane %v186_v42, 4 }
  0xe9   :  { %v169_v51 = vadd.f32 %v168_v43, %v167_v35  ;;  %v175_v52 = vrot.slane %v174_v44, 2  ;;  %v203_v53 = vrot.slane %v202_v46, 2  ;;  %v197_v61 = vadd.f32 %v196_v45, %v195_v37 }
  0xea   :  { %v155_v54 = vadd.f32 %v154_v47, %v153_v39  ;;  %v160_v55 = vadd.f32 %v159_v48, %v158_v40  ;;  %v181_v56 = vadd.f32 %v180_v49, %v179_v41  ;;  %v188_v57 = vadd.f32 %v187_v50, %v186_v42 }
  0xeb   :  { %v170_v59 = vrot.slane %v169_v51, 1  ;;  %v176_v60 = vadd.f32 %v175_v52, %v174_v44  ;;  %v204_v62 = vadd.f32 %v203_v53, %v202_v46  ;;  %v198_v10 = vrot.slane %v197_v61, 1 }
  0xec   :  { %v161_v63 = vrot.slane %v160_v55, 2  ;;  %v182_v0 = vrot.slane %v181_v56, 2  ;;  %v189_v1 = vrot.slane %v188_v57, 2  ;;  %v156_v5 = vrot.slane %v155_v54, 1 }
  0xed   :  { %v177_v2 = vrot.slane %v176_v60, 1  ;;  %v171_v9 = vadd.f32 %v170_v59, %v169_v51  ;;  %v205_v11 = vrot.slane %v204_v62, 1  ;;  %v199_v23 = vadd.f32 %v198_v10, %v197_v61 }
  0xee   :  { %v162_v6 = vadd.f32 %v161_v63, %v160_v55  ;;  %v183_v7 = vadd.f32 %v182_v0, %v181_v56  ;;  %v190_v8 = vadd.f32 %v189_v1, %v188_v57  ;;  %v157_v19 = vadd.f32 %v156_v5, %v155_v54 }
  0xef   :  { %v178_v13 = vadd.f32 %v177_v2, %v176_v60  ;;  %v229_v24 = vmul.f32 %v213_v4, %v171_v9  ;;  %v217_v25 = vrot.slane %v211_v58, 6  ;;  %v206_v27 = vadd.f32 %v205_v11, %v204_v62 }
  0xf0   :  { %v163_v14 = vrot.slane %v162_v6, 1  ;;  %v184_v15 = vrot.slane %v183_v7, 1  ;;  %v191_v16 = vrot.slane %v190_v8, 1  ;;  %v218_v28 = vrot.slane %v211_v58, 7 }
  0xf1   :  { %v230_v29 = vmul.f32 %v214_v12, %v178_v13  ;;  %v227_v31 = vmul.f32 %v211_v58, %v157_v19  ;;  %v246_v34 = vrot.slane %v229_v24, 6  ;;  %v233_v35 = vmul.f32 %v217_v25, %v199_v23 }
  0xf2   :  { %v164_v20 = vadd.f32 %v163_v14, %v162_v6  ;;  %v185_v21 = vadd.f32 %v184_v15, %v183_v7  ;;  %v192_v22 = vadd.f32 %v191_v16, %v190_v8  ;;  %v234_v36 = vmul.f32 %v218_v28, %v206_v27 }
  0xf3   :  { %v249_v38 = vrot.slane %v230_v29, 5  ;;  %v258_v44 = vrot.slane %v233_v35, 2 }
  0xf4   :  { %v228_v26 = vmul.f32 %v212_v3, %v164_v20  ;;  %v231_v30 = vmul.f32 %v215_v17, %v185_v21  ;;  %v232_v33 = vmul.f32 %v216_v18, %v192_v22  ;;  %v261_v46 = vrot.slane %v234_v36, 1 }
  0xf6   :  { %v243_v32 = vrot.slane %v228_v26, 7  ;;  %v252_v40 = vrot.slane %v231_v30, 4  ;;  %v255_v42 = vrot.slane %v232_v33, 3 }
  0xf8   :  { %v245_v37 = vsel %vm244_vm3, %v243_v32, %v227_v31 }
  0xf9   :  { %v248_v39 = vsel %vm247_vm4, %v246_v34, %v245_v37 }
  0xfa   :  { %v251_v41 = vsel %vm250_vm5, %v249_v38, %v248_v39 }
  0xfb   :  { %v254_v43 = vsel %vm253_vm6, %v252_v40, %v251_v41 }
  0xfc   :  { %v257_v45 = vsel %vm256_vm7, %v255_v42, %v254_v43 }
  0xfd   :  { %v260_v47 = vsel %vm259_vm8, %v258_v44, %v257_v45 }
  0xfe   :  { %v263_v48 = vsel %vm262_vm9, %v261_v46, %v260_v47 }
  0xff   :  { %266 = vst.msk [vmem:[#allocation2] sm:$0xff] %vm265_vm10, %v263_v48 }
 0x100   :  { %328 = shalt.err (!%p325_p4)
}
 0x101   :  { %s329_s8 = scalar_lea.hbm %s427_s4, 128 }
 0x102   :  { %p330_p5 = scmp.ne.s32.totalorder %s427_s4, %s329_s8  ;;  %p333_p6 = scmp.lt.u32.totalorder %s329_s8, %s427_s4 }
 0x104   :  { %p335_p7 = pnand %p333_p6, %p330_p5 }
 0x106   :  { %338 = shalt.err (!%p335_p7)
}
 0x107   :  { %276 = dma.vmem_to_hbm [thread:$0]  %s274_s2, 128, %s427_s4, [#allocation3]  }
 0x108   :  { %339 = dma.done.wait [#allocation3], 128  }
 0x109   :  { %340 = vsyncadd [#allocation3], 4294967168 }
 0x10a   :  { %280 = vsyncpa [#allocation3], 1 }

</bundles_post_ra>
